<compile_context>
chip_gen: v6e
topology: v6e:2x2x1
jax: 0.10.0
libtpu: 0.0.40
codegen_flags: <defaults>
</compile_context>

<pallas_src>
import functools

import jax
import jax.numpy as jnp
from jax.experimental import pallas as pl
from jax.experimental.pallas import tpu as pltpu


def _round_up(x, m):
    return ((x + m - 1) // m) * m


def _round_down(x, m):
    return (x // m) * m


# Double-buffered working set target; fits v5e's 16 MiB default scoped VMEM
# (and v6e/v7x's 32 MiB) with headroom.
_VMEM_BUDGET_BYTES = 10 * 1024 * 1024
# Row granule: multiple of the sublane packing for f32 (8), bf16 (16), int8 (32).
_ROW_GRANULE = 32


def _mce_loss_kernel(recon_ref, msg_ref, out_ref, *, blocks_per_group, total_rows):
    """recon_ref/msg_ref: (rb, W) native-dtype tiles (symbols on sublanes,
    classes on lanes); out_ref: (8, 128) f32 per-group accumulator block."""
    o = pl.program_id(0)          # TensorCore group (v7x megacore split)
    i = pl.program_id(1)          # row-block within the group (reduction axis)

    @pl.when(i == 0)
    def _init():
        out_ref[...] = jnp.zeros_like(out_ref)

    # Single read of each tile; upcast to f32 in-kernel (VPU slot, free slack).
    logits = recon_ref[...].astype(jnp.float32)          # (rb, W)
    msg = msg_ref[...].astype(jnp.float32)               # (rb, W)
    rb, w = logits.shape

    cls = jax.lax.broadcasted_iota(jnp.int32, (rb, w), 1)

    # First-occurrence argmax of the message over classes (lane axis).
    msg_max = jnp.max(msg, axis=1, keepdims=True)                              # (rb, 1)
    tgt = jnp.min(jnp.where(msg == msg_max, cls, w), axis=1, keepdims=True)    # (rb, 1)

    # Shared shifted logits: the per-row max cancels between logsumexp and the
    # selected logit, so everything stays in the shifted (<= 0) domain.
    row_max = jnp.max(logits, axis=1, keepdims=True)                           # (rb, 1)
    shifted = logits - row_max
    sel = jnp.sum(jnp.where(cls == tgt, shifted, 0.0), axis=1, keepdims=True)  # (rb, 1)
    lse = jnp.log(jnp.sum(jnp.exp(shifted), axis=1, keepdims=True))            # (rb, 1)
    loss_rows = lse - sel                                                      # (rb, 1)

    # Mask rows past the end of the array (ragged tail of the last block and
    # fully out-of-range clamped blocks).  The mask uses the *logical* block
    # index so duplicated clamped fetches contribute exactly zero; the select
    # also discards any NaN/Inf produced from garbage in out-of-bounds rows.
    logical_block = o * blocks_per_group + i
    row = jax.lax.broadcasted_iota(jnp.int32, (rb, 1), 0)
    valid = (logical_block * rb + row) < total_rows
    partial = jnp.sum(jnp.where(valid, loss_rows, 0.0), axis=0, keepdims=True)  # (1, 1)

    out_ref[...] += partial        # broadcast add into the resident (8,128) block


@functools.partial(jax.jit, static_argnums=(2, 3, 4))
def multiple_cross_entropy_loss(reconstruction, message, representation_size,
                                message_length, block_rows=None):
    """reconstruction: (1, representation_size); message: (representation_size,)."""
    assert representation_size % message_length == 0
    L = message_length
    W = representation_size // message_length
    assert reconstruction.shape == (1, representation_size)
    assert message.shape == (representation_size,)

    # Free row-major reshape views, native dtypes — no extra HBM passes.
    recon_lw = reconstruction.reshape(L, W)
    msg_lw = message.reshape(L, W)

    # Auto-size the row block from the VMEM budget.  In VMEM the lane axis (W)
    # pads up to 128, but that is a VMEM-only cost: each (rb, W) block is one
    # contiguous HBM DMA of rb*W*itemsize bytes.
    lanes = _round_up(W, 128)
    per_row_vmem = lanes * (recon_lw.dtype.itemsize + msg_lw.dtype.itemsize)
    if block_rows is None:
        rb = _VMEM_BUDGET_BYTES // (2 * per_row_vmem)          # 2x double-buffering
        rb = max(_ROW_GRANULE, _round_down(rb, _ROW_GRANULE))
    else:
        rb = max(_ROW_GRANULE, _round_down(int(block_rows), _ROW_GRANULE))
    if rb >= L:
        rb = L                      # full-dim block is always layout-legal
    nb = pl.cdiv(L, rb)             # total row blocks

    # v7x: shard row blocks across the two TensorCores ("parallel" outer axis).
    # Harmless (one extra outer iteration) on single-TC v5e/v6e.
    groups = 2 if nb >= 2 else 1
    npg = pl.cdiv(nb, groups)

    def row_block(o, i):
        # Clamp so a trailing logical block (when nb is odd) fetches a valid
        # block; its contribution is zeroed by the in-kernel row mask.
        return jnp.minimum(o * npg + i, nb - 1)

    kernel = functools.partial(_mce_loss_kernel,
                               blocks_per_group=npg, total_rows=L)

    out = pl.pallas_call(
        kernel,
        # Lane-dense (8, 128) accumulator block per group; written back once.
        out_shape=jax.ShapeDtypeStruct((groups * 8, 128), jnp.float32),
        grid_spec=pltpu.PrefetchScalarGridSpec(
            num_scalar_prefetch=0,
            grid=(groups, npg),
            in_specs=[
                pl.BlockSpec((rb, W), lambda o, i: (row_block(o, i), 0)),
                pl.BlockSpec((rb, W), lambda o, i: (row_block(o, i), 0)),
            ],
            out_specs=pl.BlockSpec((8, 128), lambda o, i: (o, 0)),
        ),
        compiler_params=pltpu.CompilerParams(
            dimension_semantics=("parallel", "arbitrary"),
        ),
    )(recon_lw, msg_lw)

    # Every element of a group's (8, 128) block holds that group's partial sum.
    return jnp.sum(out.reshape(groups, 8 * 128)[:, 0])


def _reference(reconstruction, message, representation_size, message_length):
    W = representation_size // message_length
    r = reconstruction.reshape(message_length, W).astype(jnp.float32)
    m = message.reshape(message_length, W).astype(jnp.float32)
    tgt = jnp.argmax(m, axis=-1)
    lse = jax.scipy.special.logsumexp(r, axis=-1)
    sel = jnp.take_along_axis(r, tgt[:, None], axis=-1)[:, 0]
    return jnp.sum(lse - sel)


def _check(loss, ref, atol, rtol=1e-5):
    loss = float(loss)
    ref = float(ref)
    assert abs(loss - ref) <= atol + rtol * abs(ref), (loss, ref)


if __name__ == "__main__":
    key = jax.random.PRNGKey(0)
    k1, k2, k3, k4, k5, k6 = jax.random.split(key, 6)

    # Case 1: original toy size (single block, single group).
    rep1, L1 = 64, 8
    recon1 = jax.random.normal(k1, (1, rep1), dtype=jnp.float32)
    message1 = jax.random.normal(k2, (rep1,), dtype=jnp.float32)
    loss1 = jax.block_until_ready(
        multiple_cross_entropy_loss(recon1, message1, rep1, L1))
    _check(loss1, _reference(recon1, message1, rep1, L1), atol=1e-4)

    # Case 2: larger symbol count, auto-sized block (still one block).
    L2, W2 = 1500, 8
    rep2 = L2 * W2
    recon2 = jax.random.normal(k3, (1, rep2), dtype=jnp.float32)
    message2 = jax.random.normal(k4, (rep2,), dtype=jnp.float32)
    ref2 = _reference(recon2, message2, rep2, L2)
    loss2 = jax.block_until_ready(
        multiple_cross_entropy_loss(recon2, message2, rep2, L2))
    _check(loss2, ref2, atol=5e-3)

    # Case 3: forced small blocks -> multi-block grid, two-group (megacore)
    # split, clamped trailing logical block, masked ragged tail.
    loss3 = jax.block_until_ready(
        multiple_cross_entropy_loss(recon2, message2, rep2, L2, 512))
    _check(loss3, ref2, atol=5e-3)

    # Case 4: bf16 reconstruction in native dtype (upcast happens in-kernel),
    # forced small blocks with a ragged tail.
    L4, W4 = 100, 16
    rep4 = L4 * W4
    recon4 = jax.random.normal(k5, (1, rep4), dtype=jnp.float32).astype(jnp.bfloat16)
    message4 = jax.random.normal(k6, (rep4,), dtype=jnp.float32)
    loss4 = jax.block_until_ready(
        multiple_cross_entropy_loss(recon4, message4, rep4, L4, 32))
    _check(loss4, _reference(recon4, message4, rep4, L4), atol=1e-3)

    print("KERNEL_OK")
</pallas_src>

<mosaic_0001>
module attributes {stable_mosaic.version = 11 : i64} {
  func.func @_mce_loss_kernel(%arg0: i32, %arg1: i32, %arg2: memref<8x8xf32, #tpu.memory_space<vmem>>, %arg3: memref<8x8xf32, #tpu.memory_space<vmem>>, %arg4: memref<8x128xf32, #tpu.memory_space<vmem>>) attributes {dimension_semantics = [#tpu.dimension_semantics<parallel>, #tpu.dimension_semantics<arbitrary>], iteration_bounds = array<i64: 1, 1>, scalar_prefetch = 0 : i64, scratch_operands = 0 : i64, tpu.core_type = #tpu.core_type<tc>, window_params = [{transform_indices = @transform_0, window_bounds = array<i64: 8, 8>}, {transform_indices = @transform_1, window_bounds = array<i64: 8, 8>}, {transform_indices = @transform_2, window_bounds = array<i64: 8, 128>}]} {
    %c0_i32 = arith.constant 0 : i32
    %0 = arith.cmpi eq, %arg1, %c0_i32 : i32
    %1 = arith.extui %0 : i1 to i32
    %c0_i32_0 = arith.constant 0 : i32
    %2 = arith.cmpi ne, %1, %c0_i32_0 : i32
    scf.if %2 {
      %cst_17 = arith.constant 0.000000e+00 : f32
      %45 = vector.broadcast %cst_17 : f32 to vector<8x128xf32>
      %c0_18 = arith.constant 0 : index
      %c0_19 = arith.constant 0 : index
      %46 = vector.load %arg4[%c0_18, %c0_19] : memref<8x128xf32, #tpu.memory_space<vmem>>, vector<8x128xf32>
      tpu.vector_store %arg4[%c0_18, %c0_19], %45 {strides = array<i32>} : memref<8x128xf32, #tpu.memory_space<vmem>>, vector<8x128xf32>,
    } else {
    }
    %c0 = arith.constant 0 : index
    %c0_1 = arith.constant 0 : index
    %3 = vector.load %arg2[%c0, %c0_1] : memref<8x8xf32, #tpu.memory_space<vmem>>, vector<8x8xf32>
    %c0_2 = arith.constant 0 : index
    %c0_3 = arith.constant 0 : index
    %4 = vector.load %arg3[%c0_2, %c0_3] : memref<8x8xf32, #tpu.memory_space<vmem>>, vector<8x8xf32>
    %5 = tpu.iota {dimensions = array<i32: 1>} : vector<8x8xi32>
    %cst = arith.constant dense<0xFF800000> : vector<8xf32>
    %6 = vector.multi_reduction <maximumf>, %4, %cst [1] : vector<8x8xf32> to vector<8xf32>
    %7 = vector.shape_cast %6 : vector<8xf32> to vector<8x1xf32>
    %8 = vector.broadcast %7 : vector<8x1xf32> to vector<8x8xf32>
    %9 = arith.cmpf oeq, %4, %8 : vector<8x8xf32>
    %c8_i32 = arith.constant 8 : i32
    %10 = vector.broadcast %c8_i32 : i32 to vector<8x8xi32>
    %11 = arith.select %9, %5, %10 : vector<8x8xi1>, vector<8x8xi32>
    %cst_4 = arith.constant dense<2147483647> : vector<8xi32>
    %12 = vector.multi_reduction <minsi>, %11, %cst_4 [1] : vector<8x8xi32> to vector<8xi32>
    %13 = vector.shape_cast %12 : vector<8xi32> to vector<8x1xi32>
    %cst_5 = arith.constant dense<0xFF800000> : vector<8xf32>
    %14 = vector.multi_reduction <maximumf>, %3, %cst_5 [1] : vector<8x8xf32> to vector<8xf32>
    %15 = vector.shape_cast %14 : vector<8xf32> to vector<8x1xf32>
    %16 = vector.broadcast %15 : vector<8x1xf32> to vector<8x8xf32>
    %17 = arith.subf %3, %16 : vector<8x8xf32>
    %18 = vector.broadcast %13 : vector<8x1xi32> to vector<8x8xi32>
    %19 = arith.cmpi eq, %5, %18 : vector<8x8xi32>
    %cst_6 = arith.constant 0.000000e+00 : f32
    %20 = vector.broadcast %cst_6 : f32 to vector<8x8xf32>
    %21 = arith.select %19, %17, %20 : vector<8x8xi1>, vector<8x8xf32>
    %cst_7 = arith.constant dense<0.000000e+00> : vector<8xf32>
    %22 = vector.multi_reduction <add>, %21, %cst_7 [1] : vector<8x8xf32> to vector<8xf32>
    %23 = vector.shape_cast %22 : vector<8xf32> to vector<8x1xf32>
    %24 = math.exp %17 : vector<8x8xf32>
    %cst_8 = arith.constant dense<0.000000e+00> : vector<8xf32>
    %25 = vector.multi_reduction <add>, %24, %cst_8 [1] : vector<8x8xf32> to vector<8xf32>
    %26 = vector.shape_cast %25 : vector<8xf32> to vector<8x1xf32>
    %27 = math.log %26 : vector<8x1xf32>
    %28 = arith.subf %27, %23 : vector<8x1xf32>
    %c1_i32 = arith.constant 1 : i32
    %29 = arith.muli %arg0, %c1_i32 : i32
    %30 = arith.addi %29, %arg1 : i32
    %31 = tpu.iota {dimensions = array<i32: 0>} : vector<8x1xi32>
    %c8_i32_9 = arith.constant 8 : i32
    %32 = arith.muli %30, %c8_i32_9 : i32
    %33 = vector.broadcast %32 : i32 to vector<8x1xi32>
    %34 = arith.addi %33, %31 : vector<8x1xi32>
    %c8_i32_10 = arith.constant 8 : i32
    %35 = vector.broadcast %c8_i32_10 : i32 to vector<8x1xi32>
    %36 = arith.cmpi slt, %34, %35 : vector<8x1xi32>
    %cst_11 = arith.constant 0.000000e+00 : f32
    %37 = vector.broadcast %cst_11 : f32 to vector<8x1xf32>
    %38 = arith.select %36, %28, %37 : vector<8x1xi1>, vector<8x1xf32>
    %cst_12 = arith.constant dense<0.000000e+00> : vector<1xf32>
    %39 = vector.multi_reduction <add>, %38, %cst_12 [0] : vector<8x1xf32> to vector<1xf32>
    %40 = vector.shape_cast %39 : vector<1xf32> to vector<1x1xf32>
    %c0_13 = arith.constant 0 : index
    %c0_14 = arith.constant 0 : index
    %41 = vector.load %arg4[%c0_13, %c0_14] : memref<8x128xf32, #tpu.memory_space<vmem>>, vector<8x128xf32>
    %42 = vector.broadcast %40 : vector<1x1xf32> to vector<8x128xf32>
    %43 = arith.addf %41, %42 : vector<8x128xf32>
    %c0_15 = arith.constant 0 : index
    %c0_16 = arith.constant 0 : index
    %44 = vector.load %arg4[%c0_15, %c0_16] : memref<8x128xf32, #tpu.memory_space<vmem>>, vector<8x128xf32>
    tpu.vector_store %arg4[%c0_15, %c0_16], %43 {strides = array<i32>} : memref<8x128xf32, #tpu.memory_space<vmem>>, vector<8x128xf32>,
    return
  }
  func.func @transform_0(%arg0: i32, %arg1: i32) -> (i32, i32) {
    %c1_i32 = arith.constant 1 : i32
    %0 = arith.muli %arg0, %c1_i32 : i32
    %1 = arith.addi %0, %arg1 : i32
    %c0_i32 = arith.constant 0 : i32
    %2 = arith.minsi %1, %c0_i32 : i32
    %c0_i32_0 = arith.constant 0 : i32
    %c0_i32_1 = arith.constant 0 : i32
    return %2, %c0_i32_0 : i32, i32
  }
  func.func @transform_1(%arg0: i32, %arg1: i32) -> (i32, i32) {
    %c1_i32 = arith.constant 1 : i32
    %0 = arith.muli %arg0, %c1_i32 : i32
    %1 = arith.addi %0, %arg1 : i32
    %c0_i32 = arith.constant 0 : i32
    %2 = arith.minsi %1, %c0_i32 : i32
    %c0_i32_0 = arith.constant 0 : i32
    %c0_i32_1 = arith.constant 0 : i32
    return %2, %c0_i32_0 : i32, i32
  }
  func.func @transform_2(%arg0: i32, %arg1: i32) -> (i32, i32) {
    %c0_i32 = arith.constant 0 : i32
    %c0_i32_0 = arith.constant 0 : i32
    return %arg0, %c0_i32 : i32, i32
  }
}

</mosaic_0001>

<bundles_post_ra>
// kernel: multiple_cross_entropy_loss.1
= control target key start
LH: loop header
LB: loop body
LE: loop exit
PB: predicated region body
PF: predicated region fallthrough
CT: control target
= control target key end

     0   :  { %vm74_vm0 = vcmask 64512   ;;  %v72_v4 = vlaneseq  ;;  %s179_s1 = inlined_call_operand.vmem [shape: f32[8,8], index: 1, kind: input, shape index: {}]   ;;  %s180_s0 = inlined_call_operand.vmem [shape: f32[8,8], index: 0, kind: input, shape index: {}]   ;;  %s181_s2 = inlined_call_operand.vmem [shape: f32[8,128], index: 2, kind: output, shape index: {}]  }
   0x1   :  { %v71_v0 = vld [vmem:[%s179_s1] sm:$0xff] }
   0x2   :  { %v75_v1 = vsel %vm74_vm0, %v71_v0, -inf  ;;  %v70_v2 = vld [vmem:[%s180_s0] sm:$0xff]  ;;  %v73_v5 = vand.u32 127, %v72_v4 }
   0x3   :  { %76 = vmax.xlane.f32.xlu0 %v75_v1  ;;  %v95_v3 = vsel %vm74_vm0, %v70_v2, -inf }
   0x4   :  { %96 = vmax.xlane.f32.xlu1 %v95_v3 }
  0x8c   :  { %v77_v6 = vpop.xlane.xlu0 %76 }
  0x8d   :  { %vm78_vm1 = vcmp.eq.f32.partialorder %v71_v0, %v77_v6  ;;  %v97_v11 = vpop.xlane.xlu1 %96 }
  0x8e   :  { %v79_v7 = vsel %vm78_vm1, %v73_v5, 8  ;;  %v98_v12 = vsub.f32 %v70_v2, %v97_v11 }
  0x8f   :  { %v80_v8 = vsel %vm74_vm0, %v79_v7, 2147483647 }
  0x90   :  { %v82_v9 = vshra.s32 %v80_v8, 16  ;;  %v104_v13 = vmul.f32 1.442695, %v98_v12  ;;  %v81_v16 = vand.u32 65535, %v80_v8 }
  0x92   :  { %v84_v10 = vcvt.s32.f32 %v82_v9  ;;  %146 = vpow2.f32 %v104_v13  ;;  %v83_v18 = vcvt.s32.f32 %v81_v16 }
  0x94   :  { %85 = vmin.xlane.f32.xlu0 %v84_v10 }
  0x9f   :  { %v147_v14 = vpop.eup %146 }
  0xa0   :  { %v106_v15 = vsel %vm74_vm0, %v147_v14, 0.0 }
  0xa1   :  { %107 = vadd.xlane.f32.xlu0 %v106_v15 }
 0x11d   :  { %v86_v17 = vpop.xlane.xlu0 %85 }
 0x11e   :  { %vm87_vm2 = vcmp.eq.f32.partialorder %v84_v10, %v86_v17  ;;  %v92_v20 = vcvt.f32.s32 %v86_v17 }
 0x11f   :  { %v88_v19 = vsel %vm87_vm2, %v83_v18, inf }
 0x120   :  { %89 = vmin.xlane.f32.xlu1 %v88_v19  ;;  %v93_v22 = vshll.u32 %v92_v20, 16 }
 0x12a   :  { %v108_v27 = vpop.xlane.xlu0 %107 }
 0x12b   :  { %148 = vlog2.f32 %v108_v27 }
 0x138   :  { %v149_v28 = vpop.eup %148 }
 0x139   :  { %v110_v29 = vmul.f32 0.6931472, %v149_v28 }
 0x1a9   :  { %v90_v21 = vpop.xlane.xlu1 %89 }
 0x1aa   :  { %v91_v23 = vcvt.f32.s32 %v90_v21 }
 0x1ac   :  { %v94_v24 = vadd.s32 %v93_v22, %v91_v23 }
 0x1ae   :  { %vm99_vm3 = vcmp.eq.s32.totalorder %v73_v5, %v94_v24 }
 0x1af   :  { %v100_v25 = vsel %vm99_vm3, %v98_v12, 0.0 }
 0x1b0   :  { %v101_v26 = vsel %vm74_vm0, %v100_v25, 0.0 }
 0x1b1   :  { %102 = vadd.xlane.f32.xlu1 %v101_v26 }
 0x23a   :  { %v103_v30 = vpop.xlane.xlu1 %102 }
 0x23b   :  { %v111_v31 = vsub.f32 %v110_v29, %v103_v30 }
 0x23d   :  { %v120_v32 = vrot.slane %v111_v31, 4 }
 0x23f   :  { %v121_v33 = vadd.f32 %v120_v32, %v111_v31 }
 0x241   :  { %v122_v34 = vrot.slane %v121_v33, 2 }
 0x243   :  { %v123_v35 = vadd.f32 %v122_v34, %v121_v33 }
 0x245   :  { %v124_v36 = vrot.slane %v123_v35, 1 }
 0x247   :  { %v125_v37 = vadd.f32 %v124_v36, %v123_v35 }
 0x249   :  { %128 = vst [vmem:[%s181_s2] sm:$0xff] %v125_v37 }

</bundles_post_ra>
